<compile_context>
chip_gen: v7x
topology: tpu7x:2x2x1
jax: 0.10.0
libtpu: 0.0.40
codegen_flags: <defaults>
</compile_context>

<pallas_src>
import functools

import jax
import jax.numpy as jnp
from jax.experimental import pallas as pl
from jax.experimental.pallas import tpu as pltpu


def _round_up(x: int, m: int) -> int:
    return (x + m - 1) // m * m


def _vmem_capacity_bytes() -> int:
    """Physical VMEM of the local chip; conservative fallback if unqueryable."""
    try:
        return int(pltpu.get_tpu_info().vmem_capacity_bytes)
    except Exception:
        return 64 * 1024 * 1024  # v7x physical; safe lower bound for v5e/v6e too


def _block_spec(shape, index_map, *, single_buffer=False):
    """BlockSpec, optionally single-buffered for grid-invariant operands."""
    if single_buffer:
        try:
            return pl.BlockSpec(shape, index_map, pipeline_mode=pl.Buffered(1))
        except TypeError:  # older jax without pipeline_mode: default buffering
            pass
    return pl.BlockSpec(shape, index_map)


def _pick_tb(B: int) -> int:
    """Batch tile: multiple of 16 (bf16 row packing); whole batch when small;
    for large B minimize padding while preferring an even grid step count."""
    B16 = _round_up(B, 16)
    if B16 <= 256:
        return B16
    best = None
    for tb in range(256, 127, -16):
        nb = -(-B // tb)
        pad = nb * tb - B
        key = (pad, nb % 2, -tb)  # min padding, prefer even #steps, then big tiles
        if best is None or key < best[0]:
            best = (key, tb)
    return best[1]


def _footprint_bytes(tb, tk, in_dim, cls_p, nk, x_item, out_item):
    """Approximate VMEM footprint of one pipeline configuration."""
    wbuf = 1 if nk == 1 else 2            # weights single-buffered when invariant
    weights = wbuf * (in_dim * tk + tk * cls_p) * 2 + wbuf * tk * 4 + cls_p * 4
    xio = 2 * tb * in_dim * x_item + 2 * tb * cls_p * out_item
    acc = tb * cls_p * 4
    return weights + xio + acc


def _pick_tk(tb, in_dim, hid_p, cls_p, x_item, out_item, budget):
    """Largest hidden tile (multiple of 128 dividing hid_p) that fits budget."""
    lanes = hid_p // 128
    for d in range(1, lanes + 1):          # d = number of hidden (K) grid steps
        if lanes % d:
            continue
        tk = hid_p // d
        if _footprint_bytes(tb, tk, in_dim, cls_p, d, x_item, out_item) <= budget:
            return tk
    return 128


def mlp_kernel(x_ref, w1_ref, b1_ref, w2_ref, b2_ref, o_ref, acc_ref):
    """One (batch tile, hidden tile) step: relu(x@W1k + b1k) @ W2k accumulated."""
    k = pl.program_id(1)

    @pl.when(k == 0)
    def _init():
        acc_ref[...] = jnp.zeros_like(acc_ref)

    # Cast x to the MXU compute dtype in-kernel (x read from HBM exactly once).
    x = x_ref[...].astype(w1_ref.dtype)
    h = jnp.dot(x, w1_ref[...], preferred_element_type=jnp.float32)
    h = jnp.maximum(h + b1_ref[...], 0.0)            # (tb, tk) + (1, tk) broadcast
    # Keep the inter-matmul activation in bf16 (fused bias+ReLU+cast), f32 acc.
    acc_ref[...] += jnp.dot(h.astype(w2_ref.dtype), w2_ref[...],
                            preferred_element_type=jnp.float32)

    @pl.when(k == pl.num_programs(1) - 1)
    def _finalize():
        o_ref[...] = (acc_ref[...] + b2_ref[...]).astype(o_ref.dtype)


def prepare_nonlin_params(w1, b1, w2, b2, compute_dtype=jnp.bfloat16):
    """One-time pad + cast of the weights (hoisted out of the forward path).

    w1: (input_size, hidden), b1: (hidden,), w2: (hidden, n_classes), b2: (n_classes,)
    (nn.Linear weights pre-transposed).  Hidden/class dims are zero-padded to
    multiples of 128 (lane-dense); input dim is left unpadded.
    """
    in_dim, hidden = w1.shape
    n_classes = w2.shape[1]
    hid_p = _round_up(hidden, 128)
    cls_p = _round_up(n_classes, 128)
    w1_p = jnp.zeros((in_dim, hid_p), compute_dtype).at[:, :hidden].set(
        w1.astype(compute_dtype))
    b1_p = jnp.zeros((1, hid_p), jnp.float32).at[0, :hidden].set(
        b1.astype(jnp.float32))
    w2_p = jnp.zeros((hid_p, cls_p), compute_dtype).at[:hidden, :n_classes].set(
        w2.astype(compute_dtype))
    b2_p = jnp.zeros((1, cls_p), jnp.float32).at[0, :n_classes].set(
        b2.astype(jnp.float32))
    return w1_p, b1_p, w2_p, b2_p


@functools.partial(jax.jit, static_argnames=("n_classes", "out_dtype", "tb", "tk"))
def nonlin_model_fwd(x, w1_p, b1_p, w2_p, b2_p, *, n_classes,
                     out_dtype=None, tb=None, tk=None):
    """Forward: Linear -> ReLU -> Linear, using pre-padded bf16 weights."""
    B, in_dim = x.shape
    assert w1_p.shape[0] == in_dim
    hid_p = w1_p.shape[1]
    cls_p = w2_p.shape[1]
    out_dtype = x.dtype if out_dtype is None else out_dtype
    x_item = jnp.dtype(x.dtype).itemsize
    out_item = jnp.dtype(out_dtype).itemsize

    if tb is None:
        tb = _pick_tb(B)
    B_p = _round_up(B, tb)
    nb = B_p // tb

    cap = _vmem_capacity_bytes()
    if tk is None:
        tk = _pick_tk(tb, in_dim, hid_p, cls_p, x_item, out_item,
                      budget=int(cap * 0.45))
    assert hid_p % tk == 0 and tk % 128 == 0
    nk = hid_p // tk

    if B_p != B:  # batch padding only when needed (none for aligned batches)
        x = jnp.pad(x, ((0, B_p - B), (0, 0)))

    footprint = _footprint_bytes(tb, tk, in_dim, cls_p, nk, x_item, out_item)
    vmem_limit = int(min(cap * 0.9, max(footprint * 1.25 + (2 << 20), 16 << 20)))

    weights_invariant = (nk == 1)
    in_specs = [
        _block_spec((tb, in_dim), lambda i, k: (i, 0), single_buffer=(nb == 1)),
        _block_spec((in_dim, tk), lambda i, k: (0, k), single_buffer=weights_invariant),
        _block_spec((1, tk), lambda i, k: (0, k), single_buffer=weights_invariant),
        _block_spec((tk, cls_p), lambda i, k: (k, 0), single_buffer=weights_invariant),
        _block_spec((1, cls_p), lambda i, k: (0, 0), single_buffer=True),
    ]

    cost = pl.CostEstimate(
        flops=2 * B_p * (in_dim * hid_p + hid_p * cls_p),
        transcendentals=0,
        bytes_accessed=(B_p * in_dim * x_item
                        + (in_dim * hid_p + hid_p * cls_p) * 2
                        + (hid_p + cls_p) * 4
                        + B_p * cls_p * out_item),
    )

    out_p = pl.pallas_call(
        mlp_kernel,
        out_shape=jax.ShapeDtypeStruct((B_p, cls_p), out_dtype),
        grid_spec=pltpu.PrefetchScalarGridSpec(
            num_scalar_prefetch=0,
            grid=(nb, nk),                       # hidden (reduction) axis last
            in_specs=in_specs,
            out_specs=pl.BlockSpec((tb, cls_p), lambda i, k: (i, 0)),
            scratch_shapes=[pltpu.VMEM((tb, cls_p), jnp.float32)],
        ),
        compiler_params=pltpu.CompilerParams(
            dimension_semantics=("parallel", "arbitrary"),
            vmem_limit_bytes=vmem_limit,
        ),
        cost_estimate=cost,
    )(x, w1_p, b1_p, w2_p, b2_p)

    # Slice padded batch rows / padded class lanes off outside the kernel.
    return out_p[:B, :n_classes]


if __name__ == "__main__":
    # Shapes consistent with the module: input_size=32, hidden=64, n_classes=10.
    batch, input_size, hidden_size, n_classes = 16, 32, 64, 10

    key = jax.random.PRNGKey(0)
    kx, kw1, kb1, kw2, kb2 = jax.random.split(key, 5)
    x = jax.random.normal(kx, (batch, input_size), dtype=jnp.float32)
    w1 = jax.random.normal(kw1, (input_size, hidden_size), dtype=jnp.float32) * 0.1
    b1 = jax.random.normal(kb1, (hidden_size,), dtype=jnp.float32) * 0.1
    w2 = jax.random.normal(kw2, (hidden_size, n_classes), dtype=jnp.float32) * 0.1
    b2 = jax.random.normal(kb2, (n_classes,), dtype=jnp.float32) * 0.1

    params = prepare_nonlin_params(w1, b1, w2, b2)   # one-time pad/cast (hoisted)
    out = nonlin_model_fwd(x, *params, n_classes=n_classes)
    jax.block_until_ready(out)

    ref = jnp.maximum(x @ w1 + b1, 0.0) @ w2 + b2
    assert out.shape == (batch, n_classes)
    assert jnp.allclose(out, ref, atol=3e-2, rtol=3e-2), (
        float(jnp.max(jnp.abs(out - ref))))

    # Also exercise the hidden(K)-tiled + batch-padded path at small shapes.
    batch2, in2, hid2, cls2 = 20, 32, 256, 10
    k2 = jax.random.split(jax.random.PRNGKey(1), 5)
    x2 = jax.random.normal(k2[0], (batch2, in2), dtype=jnp.float32)
    w1_2 = jax.random.normal(k2[1], (in2, hid2), dtype=jnp.float32) * 0.1
    b1_2 = jax.random.normal(k2[2], (hid2,), dtype=jnp.float32) * 0.1
    w2_2 = jax.random.normal(k2[3], (hid2, cls2), dtype=jnp.float32) * 0.1
    b2_2 = jax.random.normal(k2[4], (cls2,), dtype=jnp.float32) * 0.1
    params2 = prepare_nonlin_params(w1_2, b1_2, w2_2, b2_2)
    out2 = nonlin_model_fwd(x2, *params2, n_classes=cls2, tk=128)  # force 2 K steps
    jax.block_until_ready(out2)
    ref2 = jnp.maximum(x2 @ w1_2 + b1_2, 0.0) @ w2_2 + b2_2
    assert out2.shape == (batch2, cls2)
    assert jnp.allclose(out2, ref2, atol=5e-2, rtol=5e-2), (
        float(jnp.max(jnp.abs(out2 - ref2))))

    print("KERNEL_OK")
</pallas_src>

<mosaic_0001>
module attributes {stable_mosaic.version = 11 : i64} {
  func.func @mlp_kernel(%arg0: i32, %arg1: i32, %arg2: memref<16x32xf32, #tpu.memory_space<vmem>>, %arg3: memref<32x128xbf16, #tpu.memory_space<vmem>>, %arg4: memref<1x128xf32, #tpu.memory_space<vmem>>, %arg5: memref<128x128xbf16, #tpu.memory_space<vmem>>, %arg6: memref<1x128xf32, #tpu.memory_space<vmem>>, %arg7: memref<16x128xf32, #tpu.memory_space<vmem>>, %arg8: memref<16x128xf32, #tpu.memory_space<vmem>>) attributes {dimension_semantics = [#tpu.dimension_semantics<parallel>, #tpu.dimension_semantics<arbitrary>], iteration_bounds = array<i64: 1, 1>, scalar_prefetch = 0 : i64, scratch_operands = 1 : i64, tpu.core_type = #tpu.core_type<tc>, window_params = [{pipeline_mode = #tpu.pipeline_mode<synchronous>, transform_indices = @transform_0, window_bounds = array<i64: 16, 32>}, {pipeline_mode = #tpu.pipeline_mode<synchronous>, transform_indices = @transform_1, window_bounds = array<i64: 32, 128>}, {pipeline_mode = #tpu.pipeline_mode<synchronous>, transform_indices = @transform_2, window_bounds = array<i64: 1, 128>}, {pipeline_mode = #tpu.pipeline_mode<synchronous>, transform_indices = @transform_3, window_bounds = array<i64: 128, 128>}, {pipeline_mode = #tpu.pipeline_mode<synchronous>, transform_indices = @transform_4, window_bounds = array<i64: 1, 128>}, {transform_indices = @transform_5, window_bounds = array<i64: 16, 128>}]} {
    %c0_i32 = arith.constant 0 : i32
    %0 = arith.cmpi eq, %arg1, %c0_i32 : i32
    %1 = arith.extui %0 : i1 to i32
    %c0_i32_0 = arith.constant 0 : i32
    %2 = arith.cmpi ne, %1, %c0_i32_0 : i32
    scf.if %2 {
      %cst_16 = arith.constant 0.000000e+00 : f32
      %21 = vector.broadcast %cst_16 : f32 to vector<16x128xf32>
      %c0_17 = arith.constant 0 : index
      %c0_18 = arith.constant 0 : index
      %22 = vector.load %arg8[%c0_17, %c0_18] : memref<16x128xf32, #tpu.memory_space<vmem>>, vector<16x128xf32>
      tpu.vector_store %arg8[%c0_17, %c0_18], %21 {strides = array<i32>} : memref<16x128xf32, #tpu.memory_space<vmem>>, vector<16x128xf32>,
    } else {
    }
    %c0 = arith.constant 0 : index
    %c0_1 = arith.constant 0 : index
    %3 = vector.load %arg2[%c0, %c0_1] : memref<16x32xf32, #tpu.memory_space<vmem>>, vector<16x32xf32>
    %4 = arith.truncf %3 : vector<16x32xf32> to vector<16x32xbf16>
    %c0_2 = arith.constant 0 : index
    %c0_3 = arith.constant 0 : index
    %5 = vector.load %arg3[%c0_2, %c0_3] : memref<32x128xbf16, #tpu.memory_space<vmem>>, vector<32x128xbf16>
    %cst = arith.constant dense<0.000000e+00> : vector<16x128xf32>
    %6 = tpu.matmul %4, %5, %cst {dimension_numbers = #tpu.dot_dimension_numbers<[1], [0], [0], [1], [0, 0, 1, 1], [], []>} : vector<16x32xbf16>, vector<32x128xbf16>, vector<16x128xf32> -> vector<16x128xf32>
    %c0_4 = arith.constant 0 : index
    %c0_5 = arith.constant 0 : index
    %7 = vector.load %arg4[%c0_4, %c0_5] : memref<1x128xf32, #tpu.memory_space<vmem>>, vector<1x128xf32>
    %8 = vector.broadcast %7 : vector<1x128xf32> to vector<16x128xf32>
    %9 = arith.addf %6, %8 : vector<16x128xf32>
    %cst_6 = arith.constant 0.000000e+00 : f32
    %10 = vector.broadcast %cst_6 : f32 to vector<16x128xf32>
    %11 = arith.maximumf %9, %10 : vector<16x128xf32>
    %c0_7 = arith.constant 0 : index
    %c0_8 = arith.constant 0 : index
    %12 = vector.load %arg8[%c0_7, %c0_8] : memref<16x128xf32, #tpu.memory_space<vmem>>, vector<16x128xf32>
    %13 = arith.truncf %11 : vector<16x128xf32> to vector<16x128xbf16>
    %c0_9 = arith.constant 0 : index
    %c0_10 = arith.constant 0 : index
    %14 = vector.load %arg5[%c0_9, %c0_10] : memref<128x128xbf16, #tpu.memory_space<vmem>>, vector<128x128xbf16>
    %cst_11 = arith.constant dense<0.000000e+00> : vector<16x128xf32>
    %15 = tpu.matmul %13, %14, %cst_11 {dimension_numbers = #tpu.dot_dimension_numbers<[1], [0], [0], [1], [0, 0, 1, 1], [], []>} : vector<16x128xbf16>, vector<128x128xbf16>, vector<16x128xf32> -> vector<16x128xf32>
    %16 = arith.addf %12, %15 : vector<16x128xf32>
    %c0_12 = arith.constant 0 : index
    %c0_13 = arith.constant 0 : index
    %17 = vector.load %arg8[%c0_12, %c0_13] : memref<16x128xf32, #tpu.memory_space<vmem>>, vector<16x128xf32>
    tpu.vector_store %arg8[%c0_12, %c0_13], %16 {strides = array<i32>} : memref<16x128xf32, #tpu.memory_space<vmem>>, vector<16x128xf32>,
    %c0_i32_14 = arith.constant 0 : i32
    %18 = arith.cmpi eq, %arg1, %c0_i32_14 : i32
    %19 = arith.extui %18 : i1 to i32
    %c0_i32_15 = arith.constant 0 : i32
    %20 = arith.cmpi ne, %19, %c0_i32_15 : i32
    scf.if %20 {
      %c0_16 = arith.constant 0 : index
      %c0_17 = arith.constant 0 : index
      %21 = vector.load %arg8[%c0_16, %c0_17] : memref<16x128xf32, #tpu.memory_space<vmem>>, vector<16x128xf32>
      %c0_18 = arith.constant 0 : index
      %c0_19 = arith.constant 0 : index
      %22 = vector.load %arg6[%c0_18, %c0_19] : memref<1x128xf32, #tpu.memory_space<vmem>>, vector<1x128xf32>
      %23 = vector.broadcast %22 : vector<1x128xf32> to vector<16x128xf32>
      %24 = arith.addf %21, %23 : vector<16x128xf32>
      %c0_20 = arith.constant 0 : index
      %c0_21 = arith.constant 0 : index
      %25 = vector.load %arg7[%c0_20, %c0_21] : memref<16x128xf32, #tpu.memory_space<vmem>>, vector<16x128xf32>
      tpu.vector_store %arg7[%c0_20, %c0_21], %24 {strides = array<i32>} : memref<16x128xf32, #tpu.memory_space<vmem>>, vector<16x128xf32>,
    } else {
    }
    return
  }
  func.func @transform_0(%arg0: i32, %arg1: i32) -> (i32, i32) {
    %c0_i32 = arith.constant 0 : i32
    %c0_i32_0 = arith.constant 0 : i32
    return %arg0, %c0_i32 : i32, i32
  }
  func.func @transform_1(%arg0: i32, %arg1: i32) -> (i32, i32) {
    %c0_i32 = arith.constant 0 : i32
    %c0_i32_0 = arith.constant 0 : i32
    return %c0_i32, %arg1 : i32, i32
  }
  func.func @transform_2(%arg0: i32, %arg1: i32) -> (i32, i32) {
    %c0_i32 = arith.constant 0 : i32
    %c0_i32_0 = arith.constant 0 : i32
    return %c0_i32, %arg1 : i32, i32
  }
  func.func @transform_3(%arg0: i32, %arg1: i32) -> (i32, i32) {
    %c0_i32 = arith.constant 0 : i32
    %c0_i32_0 = arith.constant 0 : i32
    return %arg1, %c0_i32 : i32, i32
  }
  func.func @transform_4(%arg0: i32, %arg1: i32) -> (i32, i32) {
    %c0_i32 = arith.constant 0 : i32
    %c0_i32_0 = arith.constant 0 : i32
    %c0_i32_1 = arith.constant 0 : i32
    return %c0_i32, %c0_i32_0 : i32, i32
  }
  func.func @transform_5(%arg0: i32, %arg1: i32) -> (i32, i32) {
    %c0_i32 = arith.constant 0 : i32
    %c0_i32_0 = arith.constant 0 : i32
    return %arg0, %c0_i32 : i32, i32
  }
}

</mosaic_0001>

<bundles_post_ra>
// kernel: nonlin_model_fwd.1
= control target key start
LH: loop header
LB: loop body
LE: loop exit
PB: predicated region body
PF: predicated region fallthrough
CT: control target
= control target key end

     0   :  { %10 = vsyncpa [#allocation4], 0  ;;  %s561_s0 = inlined_call_operand.hbm [shape: f32[16,32], index: 0, kind: input, shape index: {}]   ;;  %s562_s1 = inlined_call_operand.hbm [shape: bf16[32,128], index: 1, kind: input, shape index: {}]   ;;  %s563_s2 = inlined_call_operand.vmem [shape: f32[1,128], index: 2, kind: input, shape index: {}]   ;;  %s564_s3 = inlined_call_operand.hbm [shape: bf16[128,128], index: 3, kind: input, shape index: {}]   ;;  %s565_s4 = inlined_call_operand.vmem [shape: f32[1,128], index: 4, kind: input, shape index: {}]   ;;  %s566_s5 = inlined_call_operand.hbm [shape: f32[16,128], index: 5, kind: output, shape index: {}]  }
   0x1   :  { %11 = vsyncpa [#allocation7], 0 }
   0x2   :  { %12 = vsyncpa [#allocation5], 0  ;;  %s455_s18 = smov [#allocation6]   ;;  %s361_s22 = scalar_lea.hbm %s562_s1, 256 }
   0x3   :  { %s30_s19 = sshll.u32 %s455_s18, 4  ;;  %p362_p0 = scmp.ne.s32.totalorder %s562_s1, %s361_s22  ;;  %s31_s19 = int_to_ptr.vmem [resolvable:$true] %s30_s19 }
   0x4   :  { %p365_p1 = scmp.lt.u32.totalorder %s361_s22, %s562_s1 }
   0x6   :  { %p367_p2 = pnand %p365_p1, %p362_p0 }
   0x8   :  { %370 = shalt.err (!%p367_p2)
}
   0x9   :  { %s371_s27 = scalar_lea.vmem %s31_s19, 256  ;;  %p376_p4 = scmp.lt.s32.totalorder %s31_s19, %s31_s19 }
   0xa   :  { %p372_p3 = scmp.ne.s32.totalorder %s31_s19, %s371_s27  ;;  %p377_p5 = scmp.lt.s32.totalorder %s371_s27, %s371_s27 }
   0xc   :  { %p378_p6 = por %p377_p5, %p376_p4 }
   0xe   :  { %p379_p7 = pnand %p378_p6, %p372_p3 }
  0x10   :  { %382 = shalt.err (!%p379_p7)
}
  0x11   :  { %s456_s28 = smov 64   ;;  %s457_s29 = smov 4  }
  0x12   :  { %36 = dma.hbm_to_vmem [thread:$0]  %s562_s1, 256, %s31_s19, [#allocation7], %s456_s28, %s456_s28, %s457_s29  }
  0x13   :  { %s458_s7 = smov [#allocation3]   ;;  %s383_s11 = scalar_lea.hbm %s561_s0, 256 }
  0x14   :  { %s18_s8 = sshll.u32 %s458_s7, 4  ;;  %p384_p8 = scmp.ne.s32.totalorder %s561_s0, %s383_s11  ;;  %s19_s8 = int_to_ptr.vmem [resolvable:$true] %s18_s8 }
  0x15   :  { %p387_p9 = scmp.lt.u32.totalorder %s383_s11, %s561_s0 }
  0x17   :  { %p389_p10 = pnand %p387_p9, %p384_p8 }
  0x19   :  { %392 = shalt.err (!%p389_p10)
}
  0x1a   :  { %s393_s16 = scalar_lea.vmem %s19_s8, 256  ;;  %p398_p12 = scmp.lt.s32.totalorder %s19_s8, %s19_s8 }
  0x1b   :  { %p394_p11 = scmp.ne.s32.totalorder %s19_s8, %s393_s16  ;;  %p399_p13 = scmp.lt.s32.totalorder %s393_s16, %s393_s16 }
  0x1d   :  { %p400_p0 = por %p399_p13, %p398_p12 }
  0x1f   :  { %p401_p1 = pnand %p400_p0, %p394_p11 }
  0x21   :  { %404 = shalt.err (!%p401_p1)
}
  0x22   :  { %s459_s1 = smov 128   ;;  %s460_s17 = smov 8  }
  0x23   :  { %24 = dma.hbm_to_vmem [thread:$0]  %s561_s0, 256, %s19_s8, [#allocation4], %s459_s1, %s459_s1, %s460_s17  }
  0x24   :  { %s461_s20 = smov [#allocation8]   ;;  %s405_s24 = scalar_lea.hbm %s564_s3, 1024 }
  0x25   :  { %s44_s21 = sshll.u32 %s461_s20, 4  ;;  %p406_p2 = scmp.ne.s32.totalorder %s564_s3, %s405_s24  ;;  %s45_s21 = int_to_ptr.vmem [resolvable:$true] %s44_s21 }
  0x26   :  { %p409_p3 = scmp.lt.u32.totalorder %s405_s24, %s564_s3 }
  0x28   :  { %p411_p4 = pnand %p409_p3, %p406_p2 }
  0x2a   :  { %414 = shalt.err (!%p411_p4)
}
  0x2b   :  { %s415_s6 = scalar_lea.vmem %s45_s21, 1024  ;;  %p420_p6 = scmp.lt.s32.totalorder %s45_s21, %s45_s21 }
  0x2c   :  { %p416_p5 = scmp.ne.s32.totalorder %s45_s21, %s415_s6  ;;  %p421_p7 = scmp.lt.s32.totalorder %s415_s6, %s415_s6 }
  0x2e   :  { %p422_p8 = por %p421_p7, %p420_p6 }
  0x30   :  { %p423_p9 = pnand %p422_p8, %p416_p5 }
  0x32   :  { %426 = shalt.err (!%p423_p9)
}
  0x33   :  { %50 = dma.hbm_to_vmem [thread:$0]  %s564_s3, 1024, %s45_s21, [#allocation7], %s456_s28, %s456_s28, %s457_s29  }
  0x34   :  { %449 = dma.done.wait [#allocation4], 256  }
  0x35   :  { %450 = vsyncadd [#allocation4], 4294967040 }
  0x36   :  { %451 = dma.done.wait [#allocation7], 1280  }
  0x37   :  { %452 = vsyncadd [#allocation7], 4294966016  ;;  %v462_v0 = vmov 0.0   ;;  %vm463_vm0 = vmmov 0   ;;  %v351_v1 = vld [vmem:[#allocation6] sm:$0xff]   ;;  %v352_v2 = vld [vmem:[#allocation6 + $0x8] sm:$0xff]  }
  0x38   :  { %313 = vmatprep.subr.bf16.mxu0 %v462_v0  ;;  %317 = vmatprep.mubr.msk.bf16.mxu0 %vm463_vm0, %v462_v0  ;;  %v69_v3 = vld [vmem:[#allocation3] sm:$0xff]  ;;  %v70_v4 = vld [vmem:[#allocation3 + $0x8] sm:$0xff]  ;;  %vm95_vm1 = vcmask 261120   ;;  %v355_v8 = vld [vmem:[#allocation8 + $0x10] sm:$0xff]   ;;  %s464_s9 = smov [#allocation9]  }
  0x39   :  { %321 = vmatprep.subr.bf16.mxu1 %v462_v0  ;;  %337 = vmatprep.mubr.msk.bf16.mxu1 %vm463_vm0, %v462_v0  ;;  %v353_v5 = vld [vmem:[#allocation8] sm:$0xff]   ;;  %v71_v6 = vpack.c.bf16 %v70_v4, %v69_v3  ;;  %v354_v7 = vld [vmem:[#allocation8 + $0x8] sm:$0xff]   ;;  %v356_v9 = vld [vmem:[#allocation8 + $0x18] sm:$0xff]   ;;  %s275_s10 = sshll.u32 %s464_s9, 4  ;;  %s276_s10 = int_to_ptr.vmem [resolvable:$true] %s275_s10 }
  0x3a   :  { %314 = vmatpush3.bf16.msra.mxu0 %v351_v1  ;;  %322 = vmatpush3.bf16.msra.mxu1 %v353_v5  ;;  %v357_v10 = vld [vmem:[#allocation8 + $0x20] sm:$0xff]   ;;  %v358_v11 = vld [vmem:[#allocation8 + $0x28] sm:$0xff]   ;;  %v359_v12 = vld [vmem:[#allocation8 + $0x30] sm:$0xff]   ;;  %p432_p11 = scmp.lt.s32.totalorder %s276_s10, %s276_s10 }
  0x3b   :  { %315 = vmatprep.subr.bf16.mxu0 %v462_v0  ;;  %323 = vmatprep.subr.bf16.mxu1 %v462_v0  ;;  %v360_v13 = vld [vmem:[#allocation8 + $0x38] sm:$0xff]   ;;  %v288_v14 = vld [vmem:[%s563_s2] ss:$0 sm:$0xff]  ;;  %s427_s2 = scalar_lea.vmem %s276_s10, 256 }
  0x3c   :  { %v300_v24 = vld [vmem:[%s565_s4] ss:$0 sm:$0xff]  ;;  %p428_p10 = scmp.ne.s32.totalorder %s276_s10, %s427_s2  ;;  %p433_p12 = scmp.lt.s32.totalorder %s427_s2, %s427_s2 }
  0x3e   :  { %316 = vmatpush3.bf16.msra.mxu0 %v352_v2  ;;  %324 = vmatpush3.bf16.msra.mxu1 %v354_v7  ;;  %p434_p13 = por %p433_p12, %p432_p11 }
  0x3f   :  { %325 = vmatprep.subr.bf16.mxu1 %v462_v0 }
  0x40   :  { %p435_p0 = pnand %p434_p13, %p428_p10 }
  0x41   :  { %318 = vmatmul.mubr.msk.bf16.vlgmr.msra.gmra.mrb[0].mxu0 %vm95_vm1, %v71_v6 }
  0x42   :  { %326 = vmatpush3.bf16.msra.mxu1 %v355_v8 }
  0x43   :  { %327 = vmatprep.subr.bf16.mxu1 %v462_v0 }
  0x46   :  { %328 = vmatpush3.bf16.msra.mxu1 %v356_v9 }
  0x47   :  { %329 = vmatprep.subr.bf16.mxu1 %v462_v0 }
  0x4a   :  { %330 = vmatpush3.bf16.msra.mxu1 %v357_v10 }
  0x4b   :  { %331 = vmatprep.subr.bf16.mxu1 %v462_v0 }
  0x4e   :  { %332 = vmatpush3.bf16.msra.mxu1 %v358_v11 }
  0x4f   :  { %333 = vmatprep.subr.bf16.mxu1 %v462_v0 }
  0x52   :  { %334 = vmatpush3.bf16.msra.mxu1 %v359_v12 }
  0x53   :  { %335 = vmatprep.subr.bf16.mxu1 %v462_v0 }
  0x56   :  { %336 = vmatpush3.bf16.msra.mxu1 %v360_v13 }
 0x114   :  { %v133_v15 = vpop.f32.mrb[0].mxu0 }
 0x115   :  { %v134_v16 = vadd.f32 %v288_v14, %v133_v15  ;;  %v319_v17 = vpop.f32.mrb[1].mxu0 }
 0x116   :  { %v136_v18 = vpop.f32.mrb[2].mxu0 }
 0x117   :  { %v137_v19 = vadd.f32 %v288_v14, %v136_v18  ;;  %v320_v20 = vpop.f32.mrb[3].mxu0  ;;  %v140_v21 = vmax.f32 %v134_v16, 0.0 }
 0x119   :  { %v141_v22 = vmax.f32 %v137_v19, 0.0 }
 0x11b   :  { %v144_v23 = vpack.c.bf16 %v141_v22, %v140_v21 }
 0x11d   :  { %338 = vmatmul.mubr.bf16.vlgmr.msra.gmra.mrb[0].mxu1 %v144_v23 }
 0x1f0   :  { %v243_v25 = vpop.f32.mrb[0].mxu1 }
 0x1f1   :  { %v266_v26 = vadd.f32 %v300_v24, %v243_v25  ;;  %v339_v27 = vpop.f32.mrb[1].mxu1 }
 0x1f2   :  { %v246_v28 = vpop.f32.mrb[2].mxu1 }
 0x1f3   :  { %268 = vst [vmem:[#allocation9] sm:$0xff] %v266_v26  ;;  %v267_v29 = vadd.f32 %v300_v24, %v246_v28  ;;  %v340_v30 = vpop.f32.mrb[3].mxu1 }
 0x1f5   :  { %269 = vst [vmem:[#allocation9 + $0x8] sm:$0xff] %v267_v29 }
 0x1f6   :  { %438 = shalt.err (!%p435_p0)
}
 0x1f7   :  { %s439_s12 = scalar_lea.hbm %s566_s5, 256 }
 0x1f8   :  { %p440_p1 = scmp.ne.s32.totalorder %s566_s5, %s439_s12  ;;  %p443_p2 = scmp.lt.u32.totalorder %s439_s12, %s566_s5 }
 0x1fa   :  { %p445_p3 = pnand %p443_p2, %p440_p1 }
 0x1fc   :  { %448 = shalt.err (!%p445_p3)
}
 0x1fd   :  { %281 = dma.vmem_to_hbm [thread:$0]  %s276_s10, 256, %s566_s5, [#allocation5], %s459_s1, %s459_s1, %s460_s17  }
 0x1fe   :  { %453 = dma.done.wait [#allocation5], 256  }
 0x1ff   :  { %454 = vsyncadd [#allocation5], 4294967040 }
 0x200   :  { %285 = vsyncpa [#allocation4], 1 }
 0x201   :  { %286 = vsyncpa [#allocation7], 1 }
 0x202   :  { %287 = vsyncpa [#allocation5], 1 }

</bundles_post_ra>
